<compile_context>
chip_gen: v6e
topology: v6e:2x2x1
jax: 0.10.0
libtpu: 0.0.40
codegen_flags: <defaults>
</compile_context>

<pallas_src>
import functools

import jax
import jax.numpy as jnp
from jax.experimental import pallas as pl
from jax.experimental.pallas import tpu as pltpu


def _round_up(x, m):
    return (x + m - 1) // m * m


def _pick_m_tiling(M):
    """Return (Mp, tm): padded M and M-tile (multiple of 16, divides Mp).

    Prefers >= 2 M-blocks so the 'parallel' grid axis can be sharded across
    both TensorCores on v7x."""
    if M > 256:
        Mp = _round_up(M, 256)
        tm = 512 if (Mp % 512 == 0 and Mp // 512 >= 2) else 256
        return Mp, tm
    Mp = _round_up(M, 16)
    m = Mp // 16
    target = max(1, m // 2)
    d = 1
    for cand in range(1, m + 1):
        if m % cand == 0 and cand <= target:
            d = cand
    return Mp, 16 * d


def _pick_tk(Kp):
    """Largest K tile <= 512, multiple of 128, dividing Kp."""
    tk = 128
    for t in range(128, min(512, Kp) + 1, 128):
        if Kp % t == 0:
            tk = t
    return tk


# --------------------------------------------------------------------------
# Pallas kernels
# --------------------------------------------------------------------------
def _gemm_fused_kernel(a_ref, b_ref, shift_ref, o_ref, *rest,
                       tk, slope, compute_stats):
    """Tiled GEMM, resident weights, f32 scratch accumulator, fused epilogue.

    Grid = (M tiles, K tiles).  b_ref holds the full (Kp, Cp) weight matrix
    resident in VMEM; each K step slices a (tk, Cp) chunk.  The last K step
    optionally emits raw column stats (sum / sum-of-squares) and applies
    y = leaky_relu(acc + shift), storing bf16."""
    if compute_stats:
        stats_ref, acc_ref = rest
    else:
        (acc_ref,) = rest

    k = pl.program_id(1)

    @pl.when(k == 0)
    def _():
        acc_ref[...] = jnp.zeros_like(acc_ref)

    koff = pl.multiple_of(k * tk, tk)
    acc_ref[...] += jnp.dot(a_ref[...], b_ref[pl.ds(koff, tk), :],
                            preferred_element_type=jnp.float32)

    @pl.when(k == pl.num_programs(1) - 1)
    def _():
        acc = acc_ref[...]
        if compute_stats:
            stats_ref[0, 0:1, :] = jnp.sum(acc, axis=0, keepdims=True)
            stats_ref[0, 1:2, :] = jnp.sum(acc * acc, axis=0, keepdims=True)
        y = acc + shift_ref[...]
        if slope != 1.0:
            y = jnp.where(y >= 0, y, slope * y)
        o_ref[...] = y.astype(o_ref.dtype)


def pallas_gemm_fused(a, b, shift, *, slope, compute_stats, tm, tk):
    """a: (Mp, Kp) bf16, b: (Kp, Cp) bf16 (VMEM-resident), shift: (1, Cp) f32.

    Returns bf16 (Mp, Cp) output, plus (gm, 2, Cp) f32 raw column stats
    partials when compute_stats=True."""
    Mp, Kp = a.shape
    _, Cp = b.shape
    gm, gk = Mp // tm, Kp // tk

    if compute_stats:
        out_shape = (jax.ShapeDtypeStruct((Mp, Cp), jnp.bfloat16),
                     jax.ShapeDtypeStruct((gm, 2, Cp), jnp.float32))
        out_specs = (pl.BlockSpec((tm, Cp), lambda i, k: (i, 0)),
                     pl.BlockSpec((1, 2, Cp), lambda i, k: (i, 0, 0)))
    else:
        out_shape = jax.ShapeDtypeStruct((Mp, Cp), jnp.bfloat16)
        out_specs = pl.BlockSpec((tm, Cp), lambda i, k: (i, 0))

    return pl.pallas_call(
        functools.partial(_gemm_fused_kernel, tk=tk, slope=slope,
                          compute_stats=compute_stats),
        out_shape=out_shape,
        grid_spec=pltpu.PrefetchScalarGridSpec(
            num_scalar_prefetch=0,
            grid=(gm, gk),
            in_specs=[pl.BlockSpec((tm, tk), lambda i, k: (i, k)),
                      pl.BlockSpec((Kp, Cp), lambda i, k: (0, 0)),
                      pl.BlockSpec((1, Cp), lambda i, k: (0, 0))],
            out_specs=out_specs,
            scratch_shapes=[pltpu.VMEM((tm, Cp), jnp.float32)]),
        compiler_params=pltpu.CompilerParams(
            dimension_semantics=("parallel", "arbitrary"),
            vmem_limit_bytes=40 * 1024 * 1024),
    )(a, b, shift)


def _scale_shift_lrelu_kernel(x_ref, s_ref, t_ref, o_ref, *, slope):
    y = x_ref[...].astype(jnp.float32) * s_ref[...] + t_ref[...]
    o_ref[...] = jnp.where(y >= 0, y, slope * y).astype(o_ref.dtype)


def pallas_scale_shift_lrelu(x, scale, shift, slope, tm):
    """Row-tiled y = leaky_relu(x * scale + shift); bf16 in / bf16 out."""
    Mp, Cp = x.shape
    return pl.pallas_call(
        functools.partial(_scale_shift_lrelu_kernel, slope=slope),
        out_shape=jax.ShapeDtypeStruct((Mp, Cp), jnp.bfloat16),
        grid_spec=pltpu.PrefetchScalarGridSpec(
            num_scalar_prefetch=0,
            grid=(Mp // tm,),
            in_specs=[pl.BlockSpec((tm, Cp), lambda i: (i, 0)),
                      pl.BlockSpec((1, Cp), lambda i: (0, 0)),
                      pl.BlockSpec((1, Cp), lambda i: (0, 0))],
            out_specs=pl.BlockSpec((tm, Cp), lambda i: (i, 0))),
        compiler_params=pltpu.CompilerParams(
            dimension_semantics=("parallel",)),
    )(x, scale, shift)


# --------------------------------------------------------------------------
# Conv layer = reflect-pad + im2col (XLA glue, bf16) + fused Pallas GEMM
# --------------------------------------------------------------------------
def _im2col_reflect(x, stride, cin_pad, ksize=4):
    """x: (N, H, W, Cin) -> patches (N*Ho*Wo, 16*(Cin+cin_pad)), reflect pad 1.

    Channels are zero-padded *before* patch extraction so K is lane-aligned
    and no second full-tensor pad of the patch matrix is needed."""
    N, H, W, Cin = x.shape
    Ho = (H + 2 - ksize) // stride + 1
    Wo = (W + 2 - ksize) // stride + 1
    xp = jnp.pad(x, ((0, 0), (1, 1), (1, 1), (0, 0)), mode="reflect")
    if cin_pad:
        xp = jnp.pad(xp, ((0, 0), (0, 0), (0, 0), (0, cin_pad)))
    cols = [xp[:,
               kh:kh + stride * (Ho - 1) + 1:stride,
               kw:kw + stride * (Wo - 1) + 1:stride, :]
            for kh in range(ksize) for kw in range(ksize)]
    patches = jnp.concatenate(cols, axis=-1)        # (N, Ho, Wo, 16*Cin_p)
    K = ksize * ksize * (Cin + cin_pad)
    return patches.reshape(N * Ho * Wo, K), Ho, Wo


def _prep_weight(w, cin_pad, Cp):
    """w: PyTorch (Cout, Cin, 4, 4) -> bf16 (16*(Cin+cin_pad), Cp)."""
    Cout, Cin, KH, KW = w.shape
    wt = jnp.transpose(w, (2, 3, 1, 0))              # (KH, KW, Cin, Cout)
    if cin_pad:
        wt = jnp.pad(wt, ((0, 0), (0, 0), (0, cin_pad), (0, 0)))
    wmat = wt.reshape(KH * KW * (Cin + cin_pad), Cout)
    if Cp > Cout:
        wmat = jnp.pad(wmat, ((0, 0), (0, Cp - Cout)))
    return wmat.astype(jnp.bfloat16)


def conv_layer(x, w, stride, bias=None, bn=None, slope=1.0, eps=1e-5):
    """x: (N,H,W,Cin) NHWC (f32 or bf16).  w: PyTorch layout (Cout, Cin, 4, 4).
    bn: None or (gamma, beta) -> training-mode BatchNorm with batch stats.
    slope: LeakyReLU negative slope (1.0 => identity / no activation)."""
    N, H, W, Cin = x.shape
    Cout = w.shape[0]
    Cin_p = _round_up(Cin, 8)          # 16*Cin_p is a multiple of 128
    Cp = _round_up(Cout, 128)
    # TODO(synk): for the final Cout=1 layer, Cp=128 wastes 127/128 of the MXU
    # columns; acceptable at these sizes.

    patches, Ho, Wo = _im2col_reflect(x.astype(jnp.bfloat16), stride,
                                      Cin_p - Cin)
    M, K = patches.shape               # K already a multiple of 128
    Mp, tm = _pick_m_tiling(M)
    tk = _pick_tk(K)
    a = patches if Mp == M else jnp.pad(patches, ((0, Mp - M), (0, 0)))
    b = _prep_weight(w, Cin_p - Cin, Cp)

    if bn is None:
        # Bias layers: fuse bias + LeakyReLU into the GEMM epilogue; no stats.
        shift = jnp.zeros((Cp,), jnp.float32)
        if bias is not None:
            shift = shift.at[:Cout].set(bias.astype(jnp.float32))
        out = pallas_gemm_fused(a, b, shift.reshape(1, Cp), slope=slope,
                                compute_stats=False, tm=tm, tk=tk)
    else:
        # BN layers: identity epilogue emits raw bf16 + f32 column stats
        # partials (padded rows/cols are zero so stats stay exact), then one
        # fused scale/shift/LeakyReLU pass.
        gamma, beta = bn
        zero_shift = jnp.zeros((1, Cp), jnp.float32)
        raw, stats = pallas_gemm_fused(a, b, zero_shift, slope=1.0,
                                       compute_stats=True, tm=tm, tk=tk)
        s = jnp.sum(stats[:, 0, :], axis=0, keepdims=True)     # (1, Cp)
        sq = jnp.sum(stats[:, 1, :], axis=0, keepdims=True)    # (1, Cp)
        mean = s / M
        var = jnp.maximum(sq / M - mean * mean, 0.0)            # biased (train)
        gamma_p = jnp.zeros((1, Cp), jnp.float32).at[0, :Cout].set(
            gamma.astype(jnp.float32))
        beta_p = jnp.zeros((1, Cp), jnp.float32).at[0, :Cout].set(
            beta.astype(jnp.float32))
        scale = gamma_p * jax.lax.rsqrt(var + eps)
        shift = beta_p - mean * scale
        out = pallas_scale_shift_lrelu(raw, scale, shift, slope, tm)

    return out[:M, :Cout].reshape(N, Ho, Wo, Cout)


# --------------------------------------------------------------------------
# Discriminator
# --------------------------------------------------------------------------
def init_params(key, in_channels=3, features=(64, 128, 256, 512)):
    ks = jax.random.split(key, 8)
    p = {}
    p["w0"] = jax.random.normal(
        ks[0], (features[0], in_channels * 2, 4, 4), jnp.float32) * 0.05
    p["b0"] = jax.random.normal(ks[1], (features[0],), jnp.float32) * 0.05
    cin = features[0]
    for i, f in enumerate(features[1:], start=1):
        p[f"w{i}"] = jax.random.normal(ks[1 + i], (f, cin, 4, 4), jnp.float32) * 0.05
        p[f"gamma{i}"] = jnp.ones((f,), jnp.float32)    # BatchNorm affine init
        p[f"beta{i}"] = jnp.zeros((f,), jnp.float32)
        cin = f
    p["w4"] = jax.random.normal(ks[6], (1, cin, 4, 4), jnp.float32) * 0.05
    p["b4"] = jax.random.normal(ks[7], (1,), jnp.float32) * 0.05
    return p


def discriminator_forward(params, x_nchw, y_nchw, features=(64, 128, 256, 512)):
    # NCHW -> NHWC
    x = jnp.transpose(x_nchw, (0, 2, 3, 1)).astype(jnp.float32)
    y = jnp.transpose(y_nchw, (0, 2, 3, 1)).astype(jnp.float32)
    h = jnp.concatenate([x, y], axis=-1)

    # initial: Conv(s=2, bias, reflect pad) + nn.LeakyReLU() default slope 0.01
    # (matches the given PyTorch module, which uses the default slope here).
    h = conv_layer(h, params["w0"], stride=2, bias=params["b0"], bn=None,
                   slope=0.01)

    # CNN blocks: Conv(no bias) + BatchNorm (batch stats) + LeakyReLU(0.2)
    strides = [1 if f == features[-1] else 2 for f in features[1:]]
    for i, s in enumerate(strides, start=1):
        h = conv_layer(h, params[f"w{i}"], stride=s, bias=None,
                       bn=(params[f"gamma{i}"], params[f"beta{i}"]), slope=0.2)

    # final: Conv(s=1, bias), no activation (slope=1.0 == identity)
    h = conv_layer(h, params["w4"], stride=1, bias=params["b4"], bn=None,
                   slope=1.0)

    # NHWC -> NCHW, back to f32 logits
    return jnp.transpose(h, (0, 3, 1, 2)).astype(jnp.float32)


if __name__ == "__main__":
    key = jax.random.PRNGKey(0)
    kx, ky, kp = jax.random.split(key, 3)

    N, C, H, W = 2, 3, 32, 32
    x = jax.random.normal(kx, (N, C, H, W), jnp.float32)
    y = jax.random.normal(ky, (N, C, H, W), jnp.float32)
    params = init_params(kp, in_channels=C)

    out = discriminator_forward(params, x, y)
    out = jax.block_until_ready(out)

    # 32 -> 16 -> 8 -> 4 -> 3 -> 2 spatially, 1 output channel (PatchGAN map)
    assert out.shape == (N, 1, 2, 2), out.shape
    assert bool(jnp.all(jnp.isfinite(out)))
    print("KERNEL_OK")
</pallas_src>

<mosaic_0001>
module attributes {stable_mosaic.version = 11 : i64} {
  func.func @_gemm_fused_kernel(%arg0: i32, %arg1: i32, %arg2: memref<256x128xbf16, #tpu.memory_space<vmem>>, %arg3: memref<128x128xbf16, #tpu.memory_space<vmem>>, %arg4: memref<1x128xf32, #tpu.memory_space<vmem>>, %arg5: memref<256x128xbf16, #tpu.memory_space<vmem>>, %arg6: memref<256x128xf32, #tpu.memory_space<vmem>>) attributes {dimension_semantics = [#tpu.dimension_semantics<parallel>, #tpu.dimension_semantics<arbitrary>], iteration_bounds = array<i64: 2, 1>, scalar_prefetch = 0 : i64, scratch_operands = 1 : i64, tpu.core_type = #tpu.core_type<tc>, window_params = [{transform_indices = @transform_0, window_bounds = array<i64: 256, 128>}, {pipeline_mode = #tpu.pipeline_mode<synchronous>, transform_indices = @transform_1, window_bounds = array<i64: 128, 128>}, {pipeline_mode = #tpu.pipeline_mode<synchronous>, transform_indices = @transform_2, window_bounds = array<i64: 1, 128>}, {transform_indices = @transform_3, window_bounds = array<i64: 256, 128>}]} {
    %c0_i32 = arith.constant 0 : i32
    %0 = arith.cmpi eq, %arg1, %c0_i32 : i32
    %1 = arith.extui %0 : i1 to i32
    %c0_i32_0 = arith.constant 0 : i32
    %2 = arith.cmpi ne, %1, %c0_i32_0 : i32
    scf.if %2 {
      %cst_9 = arith.constant 0.000000e+00 : f32
      %15 = vector.broadcast %cst_9 : f32 to vector<256x128xf32>
      %c0_10 = arith.constant 0 : index
      %c0_11 = arith.constant 0 : index
      %16 = vector.load %arg6[%c0_10, %c0_11] : memref<256x128xf32, #tpu.memory_space<vmem>>, vector<256x128xf32>
      tpu.vector_store %arg6[%c0_10, %c0_11], %15 {strides = array<i32>} : memref<256x128xf32, #tpu.memory_space<vmem>>, vector<256x128xf32>,
    } else {
    }
    %c128_i32 = arith.constant 128 : i32
    %3 = arith.muli %arg1, %c128_i32 : i32
    %4 = tpu.assume_multiple %3, 128 : i32
    %c0 = arith.constant 0 : index
    %c0_1 = arith.constant 0 : index
    %5 = vector.load %arg6[%c0, %c0_1] : memref<256x128xf32, #tpu.memory_space<vmem>>, vector<256x128xf32>
    %c0_2 = arith.constant 0 : index
    %c0_3 = arith.constant 0 : index
    %6 = vector.load %arg2[%c0_2, %c0_3] : memref<256x128xbf16, #tpu.memory_space<vmem>>, vector<256x128xbf16>
    %7 = arith.index_cast %4 : i32 to index
    %c0_4 = arith.constant 0 : index
    %8 = vector.load %arg3[%7, %c0_4] : memref<128x128xbf16, #tpu.memory_space<vmem>>, vector<128x128xbf16>
    %cst = arith.constant dense<0.000000e+00> : vector<256x128xf32>
    %9 = tpu.matmul %6, %8, %cst {dimension_numbers = #tpu.dot_dimension_numbers<[1], [0], [0], [1], [0, 0, 1, 1], [], []>} : vector<256x128xbf16>, vector<128x128xbf16>, vector<256x128xf32> -> vector<256x128xf32>
    %10 = arith.addf %5, %9 : vector<256x128xf32>
    %c0_5 = arith.constant 0 : index
    %c0_6 = arith.constant 0 : index
    %11 = vector.load %arg6[%c0_5, %c0_6] : memref<256x128xf32, #tpu.memory_space<vmem>>, vector<256x128xf32>
    tpu.vector_store %arg6[%c0_5, %c0_6], %10 {strides = array<i32>} : memref<256x128xf32, #tpu.memory_space<vmem>>, vector<256x128xf32>,
    %c0_i32_7 = arith.constant 0 : i32
    %12 = arith.cmpi eq, %arg1, %c0_i32_7 : i32
    %13 = arith.extui %12 : i1 to i32
    %c0_i32_8 = arith.constant 0 : i32
    %14 = arith.cmpi ne, %13, %c0_i32_8 : i32
    scf.if %14 {
      %c0_9 = arith.constant 0 : index
      %c0_10 = arith.constant 0 : index
      %15 = vector.load %arg6[%c0_9, %c0_10] : memref<256x128xf32, #tpu.memory_space<vmem>>, vector<256x128xf32>
      %c0_11 = arith.constant 0 : index
      %c0_12 = arith.constant 0 : index
      %16 = vector.load %arg4[%c0_11, %c0_12] : memref<1x128xf32, #tpu.memory_space<vmem>>, vector<1x128xf32>
      %17 = vector.broadcast %16 : vector<1x128xf32> to vector<256x128xf32>
      %18 = arith.addf %15, %17 : vector<256x128xf32>
      %cst_13 = arith.constant 0.000000e+00 : f32
      %19 = vector.broadcast %cst_13 : f32 to vector<256x128xf32>
      %20 = arith.cmpf oge, %18, %19 : vector<256x128xf32>
      %cst_14 = arith.constant 0.00999999977 : f32
      %21 = vector.broadcast %cst_14 : f32 to vector<256x128xf32>
      %22 = arith.mulf %21, %18 : vector<256x128xf32>
      %23 = arith.select %20, %18, %22 : vector<256x128xi1>, vector<256x128xf32>
      %24 = arith.truncf %23 : vector<256x128xf32> to vector<256x128xbf16>
      %c0_15 = arith.constant 0 : index
      %c0_16 = arith.constant 0 : index
      %25 = vector.load %arg5[%c0_15, %c0_16] : memref<256x128xbf16, #tpu.memory_space<vmem>>, vector<256x128xbf16>
      tpu.vector_store %arg5[%c0_15, %c0_16], %24 {strides = array<i32>} : memref<256x128xbf16, #tpu.memory_space<vmem>>, vector<256x128xbf16>,
    } else {
    }
    return
  }
  func.func @transform_0(%arg0: i32, %arg1: i32) -> (i32, i32) {
    %c0_i32 = arith.constant 0 : i32
    return %arg0, %arg1 : i32, i32
  }
  func.func @transform_1(%arg0: i32, %arg1: i32) -> (i32, i32) {
    %c0_i32 = arith.constant 0 : i32
    %c0_i32_0 = arith.constant 0 : i32
    %c0_i32_1 = arith.constant 0 : i32
    return %c0_i32, %c0_i32_0 : i32, i32
  }
  func.func @transform_2(%arg0: i32, %arg1: i32) -> (i32, i32) {
    %c0_i32 = arith.constant 0 : i32
    %c0_i32_0 = arith.constant 0 : i32
    %c0_i32_1 = arith.constant 0 : i32
    return %c0_i32, %c0_i32_0 : i32, i32
  }
  func.func @transform_3(%arg0: i32, %arg1: i32) -> (i32, i32) {
    %c0_i32 = arith.constant 0 : i32
    %c0_i32_0 = arith.constant 0 : i32
    return %arg0, %c0_i32 : i32, i32
  }
}

</mosaic_0001>

<bundles_post_ra>
// kernel: tpu_custom_call.1
= control target key start
LH: loop header
LB: loop body
LE: loop exit
PB: predicated region body
PF: predicated region fallthrough
CT: control target
= control target key end

     0   :  { %8 = vsyncpa [#allocation4], 0  ;;  %s1980_s0 = inlined_call_operand.hbm [shape: bf16[512,128], index: 0, kind: input, shape index: {}]   ;;  %s1981_s1 = inlined_call_operand.hbm [shape: bf16[128,128], index: 1, kind: input, shape index: {}]   ;;  %s1982_s2 = inlined_call_operand.vmem [shape: f32[1,128], index: 2, kind: input, shape index: {}]   ;;  %s1983_s3 = inlined_call_operand.hbm [shape: bf16[512,128], index: 3, kind: output, shape index: {}]  }
   0x1   :  { %10 = vsyncpa [#allocation4 + $0x1], 0 }
   0x2   :  { %11 = vsyncpa [#allocation7], 0 }
   0x3   :  { %12 = vsyncpa [#allocation5], 0 }
   0x4   :  { %14 = vsyncpa [#allocation5 + $0x1], 0  ;;  %s1710_s12 = smov 0   ;;  %s1712_s13 = smov 0  }
   0x5   :  { %s1714_s14 = smov 0   ;;  %s1716_s15 = smov 0  }
   0x6   :  { %s1718_s16 = smov 0   ;;  %s1720_s17 = smov 0  }
   0x7 LB: > { %s1151_s18 = sadd.s32 4294967295, %s1681_s17   ;;  %s1152_s19 = sadd.s32 4294967294, %s1681_s17   ;;  %s1681_s17 = sphi %s1720_s17, %s20_s17   ;;  %s1677_s16 = sphi %s1718_s16, %s2005_s16   ;;  %s1673_s15 = sphi %s1716_s15, %s2004_s15   ;;  %s1669_s14 = sphi %s1714_s14, %s2003_s14   ;;  %s1665_s13 = sphi %s1712_s13, %s2002_s13   ;;  %s1661_s12 = sphi %s1710_s12, %s2001_s12  }
   0x8   : > { %p54_p0 = scmp.ne.s32.totalorder %s1665_s13, %s1661_s12  ;;  %p1744_p1 = scmp.eq.s32.totalorder %s1151_s18, 0 }
   0x9   : > { %p1748_p2 = scmp.eq.s32.totalorder %s1151_s18, 1  ;;  %p126_p3 = scmp.eq.s32.totalorder %s1152_s19, 1 }
   0xa   : > { %p1754_p4 = por %p1744_p1, %p54_p0  ;;  %p1153_p5 = scmp.ge.s32.totalorder %s1681_s17, 1 }
   0xb   : > { %p1759_p6 = por %p126_p3, %p54_p0  ;;  %p133_p7 = scmp.lt.s32.totalorder %s1681_s17, 3 }
   0xc   : > { %s1989_s22 = scalar_select %p1754_p4, 1, 0 }
   0xd   : > { %s1990_s23 = scalar_select %p1759_p6, 1, 0 }
   0xe   : > { %p1764_p8 = pnand %p1153_p5, %p133_p7  ;;  %s1683_s25 = smov [#allocation6]  }
   0xf   : > { %s145_s26 = sshll.u32 %s1683_s25, 4  ;;  %s32_s28 = sadd.s32 1, %s1677_s16  ;;  %s146_s26 = int_to_ptr.vmem [resolvable:$true] %s145_s26 }
  0x10   : > { %p1450_p9 = pneg %p1764_p8  ;;  %s1554_s29 = scalar_lea.vmem %s146_s26, 1024 }
  0x11   : > { %p1555_p13 = scmp.ne.s32.totalorder %s146_s26, %s1554_s29  ;;  %p1562_p5 = scmp.lt.s32.totalorder %s146_s26, %s146_s26 }
  0x12   : > { %p1773_p11 = pnand %p1450_p9, %p1744_p1  ;;  %p1563_p7 = scmp.lt.s32.totalorder %s1554_s29, %s1554_s29 }
  0x14   : > { %p1545_p12 = pneg %p1773_p11  ;;  %p1564_p6 = por %p1563_p7, %p1562_p5 }
  0x16   : > { %p1557_p0 = pnand %p1555_p13, %p1545_p12 }
  0x18   : > { %p1558_p3 = pneg %p1557_p0 }
  0x1a   : > { %p1565_p4 = pnand %p1564_p6, %p1558_p3 }
  0x1c   : > { %1568 = shalt.err (!%p1565_p4)
}
  0x1d   : > { %s1985_s30 = smov 64   ;;  %s1986_s4 = smov 4  }
  0x1e   : > { %1453 = dma.hbm_to_vmem [thread:$0]  (!%p1773_p11), %s1981_s1, 1024, %s146_s26, [#allocation7], %s1985_s30, %s1985_s30, %s1986_s4  }
  0x1f   : > { %p34_p4 = scmp.ge.s32.totalorder %s32_s28, 2  ;;  %s41_s7 = sadd.s32 1, %s1669_s14 }
  0x20   : > { %p48_p6 = scmp.ne.s32.totalorder %s1669_s14, %s1665_s13  ;;  %p49_p9 = scmp.eq.s32.totalorder %s1681_s17, 0 }
  0x21   : > { %s2007_s28 = smov (%p34_p4, %s32_s28), 0  ;;  %p1463_p0 = scmp.lt.s32.totalorder %s1681_s17, 2 }
  0x22   : > { %p1794_p12 = por %p49_p9, %p48_p6  ;;  %p1800_p13 = por %p1748_p2, %p48_p6 }
  0x23   : > { %s36_s10 = ssub.s32 %s1677_s16, %s2007_s28  ;;  %s162_s11 = sand.u32 1, %s1669_s14  }
  0x24   : > { %p39_p11 = scmp.eq.s32.totalorder %s36_s10, 0  ;;  %s1156_s18 = sshll.u32 %s162_s11, 7 }
  0x25   : > { %s1225_s25 = sshll.u32 %s1677_s16, 11  ;;  %s166_s5 = scalar_lea.vmem [#allocation3], %s1156_s18 }
  0x26   : > { %s1809_s19 = scalar_select %p39_p11, %s1669_s14, %s41_s7  }
  0x27   : > { %s173_s29 = scalar_lea.hbm %s1980_s0, %s1225_s25  ;;  %s174_s6 = sshll.u32 %s166_s5, 4  ;;  %s175_s6 = int_to_ptr.vmem [resolvable:$true] %s174_s6 }
  0x28   : > { %p1817_p2 = pnand %p1463_p0, %p1794_p12  ;;  %s163_s30 = scalar_lea.sflag [#allocation4], %s162_s11 }
  0x29   : > { %s1582_s10 = scalar_lea.vmem %s175_s6, 2048  ;;  %s1686_s7 = smov [#allocation3]  }
  0x2a   : > { %p1571_p3 = pneg %p1817_p2  ;;  %p1583_p5 = scmp.ne.s32.totalorder %s175_s6, %s1582_s10 }
  0x2b   : > { %s1587_s4 = sshll.u32 %s1686_s7, 4  ;;  %s1588_s4 = int_to_ptr.vmem [resolvable:$false] %s1587_s4 }
  0x2c   : > { %p1585_p7 = pnand %p1583_p5, %p1571_p3  ;;  %s1589_s25 = scalar_lea.vmem %s1588_s4, 4096 }
  0x2d   : > { %p1590_p6 = scmp.lt.s32.totalorder %s175_s6, %s1588_s4  ;;  %p1591_p9 = scmp.lt.s32.totalorder %s1589_s25, %s1582_s10 }
  0x2e   : > { %p1586_p4 = pneg %p1585_p7 }
  0x2f   : > { %p1592_p11 = por %p1591_p9, %p1590_p6 }
  0x31   : > { %p1593_p10 = pnand %p1592_p11, %p1586_p4 }
  0x33   : > { %1596 = shalt.err (!%p1593_p10)
}
  0x34   : > { %s1996_s8 = smov 4   ;;  %s1997_s18 = smov 64  }
  0x35   : > { %1457 = dma.hbm_to_vmem [thread:$0]  (!%p1817_p2), %s173_s29, 2048, %s175_s6, %s163_s30, %s1997_s18, %s1997_s18, %s1996_s8  }
  0x36   : > { %186 = sbr.rel (%p1764_p8) target bundleno = 343 (0x157), region = 32  ;;  %s1831_s11 = sand.u32 (!%p1764_p8), 1, %s1665_s13  }
  0x37   : > { %s1160_s4 = sshll.u32 (!%p1764_p8), %s1831_s11, 7  ;;  %s189_s26 = scalar_lea.sflag (!%p1764_p8), [#allocation4], %s1831_s11 }
  0x38   : > { %s1837_s27 = scalar_lea.vmem (!%p1764_p8), [#allocation3], %s1160_s4  ;;  %p1998_p10 = scmp.ne.s32.totalorder (!%p1764_p8), %s1989_s22, 0 }
  0x3b   : > { %1648 = dma.done.wait (%p1998_p10), %s189_s26, 2048  }
  0x3c   : > { %1650 = vsyncadd (%p1998_p10), %s189_s26, 4294965248 }
  0x3d   : > { %1652 = dma.done.wait (%p1744_p1), [#allocation7], 1024  }
  0x3e   : > { %1654 = vsyncadd (%p1744_p1), [#allocation7], 4294966272  ;;  %v1519_v0 = vld [vmem:[#allocation6 + $0x38] sm:$0xff]   ;;  %v1520_v1 = vld [vmem:[#allocation6 + $0x30] sm:$0xff]   ;;  %s1881_s24 = scalar_lea.vmem [#allocation8], %s1160_s4  ;;  %s1258_s30 = sshll.u32 %s1673_s15, 11 }
  0x3f   : > { %1378 = vmatprep.subr.bf16.mxu0 %v1519_v0  ;;  %1426 = vmatprep.subr.bf16.mxu1 %v1519_v0  ;;  %v1521_v2 = vld [vmem:[#allocation6 + $0x28] sm:$0xff]   ;;  %v1522_v3 = vld [vmem:[#allocation6 + $0x20] sm:$0xff]   ;;  %v1523_v6 = vld [vmem:[#allocation6 + $0x18] sm:$0xff]   ;;  %s1056_s29 = sshll.u32 %s1881_s24, 4  ;;  %s1928_s21 = scalar_lea.hbm %s1983_s3, %s1258_s30  ;;  %s1930_s29 = int_to_ptr.vmem [resolvable:$true] %s1056_s29 }
  0x40   : > { %1379 = vmatpush3.bf16.msra.mxu0 %v1519_v0  ;;  %1434 = vmatpush3.bf16.msra.mxu1 %v1519_v0  ;;  %v1527_v4 = vld [vmem:[%s1837_s27] sm:$0xff]   ;;  %v1524_v7 = vld [vmem:[#allocation6 + $0x10] sm:$0xff]   ;;  %v1525_v8 = vld [vmem:[#allocation6 + $0x8] sm:$0xff]   ;;  %s1043_s15 = scalar_lea.sflag [#allocation5], %s1831_s11  ;;  %s1597_s10 = scalar_lea.vmem %s1930_s29, 2048 }
  0x41   : > { %1380 = vmatprep.subr.bf16.mxu0 %v1520_v1  ;;  %1427 = vmatprep.subr.bf16.mxu1 %v1520_v1  ;;  %v1528_v5 = vld [vmem:[%s1837_s27 + $0x40] sm:$0xff]   ;;  %v1529_v10 = vld [vmem:[%s1837_s27 + $0x8] sm:$0xff]   ;;  %v1531_v12 = vld [vmem:[%s1837_s27 + $0x10] sm:$0xff]   ;;  %p1598_p1 = scmp.ne.s32.totalorder %s1930_s29, %s1597_s10  ;;  %s1687_s7 = smov [#allocation8]  }
  0x42   : > { %1394 = vmatprep.mubr.bf16.mxu0 %v1527_v4  ;;  %1410 = vmatprep.mubr.bf16.mxu1 %v1528_v5  ;;  %v1526_v9 = vld [vmem:[#allocation6] sm:$0xff]   ;;  %v1530_v11 = vld [vmem:[%s1837_s27 + $0x48] sm:$0xff]   ;;  %v1532_v13 = vld [vmem:[%s1837_s27 + $0x50] sm:$0xff]   ;;  %s1601_s25 = sshll.u32 %s1687_s7, 4  ;;  %s1602_s25 = int_to_ptr.vmem [resolvable:$false] %s1601_s25 }
  0x43   : > { %v1533_v14 = vld [vmem:[%s1837_s27 + $0x18] sm:$0xff]   ;;  %v1535_v16 = vld [vmem:[%s1837_s27 + $0x20] sm:$0xff]   ;;  %v1537_v18 = vld [vmem:[%s1837_s27 + $0x28] sm:$0xff]   ;;  %p1599_p8 = pnand %p1598_p1, %p1800_p13  ;;  %s1603_s8 = scalar_lea.vmem %s1602_s25, 4096 }
  0x44   : > { %1381 = vmatpush3.bf16.msra.mxu0 %v1520_v1  ;;  %1435 = vmatpush3.bf16.msra.mxu1 %v1520_v1  ;;  %v1534_v15 = vld [vmem:[%s1837_s27 + $0x58] sm:$0xff]   ;;  %v1536_v17 = vld [vmem:[%s1837_s27 + $0x60] sm:$0xff]   ;;  %v1538_v19 = vld [vmem:[%s1837_s27 + $0x68] sm:$0xff]   ;;  %p1604_p0 = scmp.lt.s32.totalorder %s1930_s29, %s1602_s25  ;;  %p1605_p2 = scmp.lt.s32.totalorder %s1603_s8, %s1597_s10 }
  0x45   : > { %1382 = vmatprep.subr.bf16.mxu0 %v1521_v2  ;;  %1428 = vmatprep.subr.bf16.mxu1 %v1521_v2  ;;  %v1539_v20 = vld [vmem:[%s1837_s27 + $0x30] sm:$0xff]   ;;  %v1541_v22 = vld [vmem:[%s1837_s27 + $0x38] sm:$0xff]   ;;  %v1866_v24 = vld [vmem:[%s1982_s2] ss:$0 sm:$0xff]  ;;  %p1600_p12 = pneg %p1599_p8 }
  0x46   : > { %v1540_v21 = vld [vmem:[%s1837_s27 + $0x70] sm:$0xff]   ;;  %v1542_v23 = vld [vmem:[%s1837_s27 + $0x78] sm:$0xff]   ;;  %p1606_p3 = por %p1605_p2, %p1604_p0 }
  0x48   : > { %1383 = vmatpush3.bf16.msra.mxu0 %v1521_v2  ;;  %1436 = vmatpush3.bf16.msra.mxu1 %v1521_v2  ;;  %p1607_p5 = pnand %p1606_p3, %p1600_p12 }
  0x49   : > { %1384 = vmatprep.subr.bf16.mxu0 %v1522_v3  ;;  %1429 = vmatprep.subr.bf16.mxu1 %v1522_v3 }
  0x4c   : > { %1385 = vmatpush3.bf16.msra.mxu0 %v1522_v3  ;;  %1437 = vmatpush3.bf16.msra.mxu1 %v1522_v3 }
  0x4d   : > { %1386 = vmatprep.subr.bf16.mxu0 %v1523_v6  ;;  %1430 = vmatprep.subr.bf16.mxu1 %v1523_v6 }
  0x50   : > { %1387 = vmatpush3.bf16.msra.mxu0 %v1523_v6  ;;  %1438 = vmatpush3.bf16.msra.mxu1 %v1523_v6 }
  0x51   : > { %1388 = vmatprep.subr.bf16.mxu0 %v1524_v7  ;;  %1431 = vmatprep.subr.bf16.mxu1 %v1524_v7 }
  0x54   : > { %1389 = vmatpush3.bf16.msra.mxu0 %v1524_v7  ;;  %1439 = vmatpush3.bf16.msra.mxu1 %v1524_v7 }
  0x55   : > { %1390 = vmatprep.subr.bf16.mxu0 %v1525_v8  ;;  %1432 = vmatprep.subr.bf16.mxu1 %v1525_v8 }
  0x58   : > { %1391 = vmatpush3.bf16.msra.mxu0 %v1525_v8  ;;  %1440 = vmatpush3.bf16.msra.mxu1 %v1525_v8 }
  0x59   : > { %1392 = vmatprep.subr.bf16.mxu0 %v1526_v9  ;;  %1433 = vmatprep.subr.bf16.mxu1 %v1526_v9 }
  0x5c   : > { %1393 = vmatpush3.bf16.msra.mxu0 %v1526_v9  ;;  %1441 = vmatpush3.bf16.msra.mxu1 %v1526_v9 }
  0x5f   : > { %1395 = vmatmul.mubr.bf16.vlgmr.msra.gmra.mxu0 %v1529_v10  ;;  %1411 = vmatmul.mubr.bf16.vlgmr.msra.gmra.mxu1 %v1530_v11 }
  0x60   : > { %1398 = vmatprep.mubr.bf16.mxu0 %v1531_v12  ;;  %1414 = vmatprep.mubr.bf16.mxu1 %v1532_v13 }
  0x67   : > { %1399 = vmatmul.mubr.bf16.gmra.mxu0 %v1533_v14  ;;  %1415 = vmatmul.mubr.bf16.gmra.mxu1 %v1534_v15 }
  0x68   : > { %1402 = vmatprep.mubr.bf16.mxu0 %v1535_v16  ;;  %1418 = vmatprep.mubr.bf16.mxu1 %v1536_v17 }
  0x6f   : > { %1403 = vmatmul.mubr.bf16.gmra.mxu0 %v1537_v18  ;;  %1419 = vmatmul.mubr.bf16.gmra.mxu1 %v1538_v19 }
  0x70   : > { %1406 = vmatprep.mubr.bf16.mxu0 %v1539_v20  ;;  %1422 = vmatprep.mubr.bf16.mxu1 %v1540_v21 }
  0x77   : > { %1407 = vmatmul.mubr.bf16.gmra.mxu0 %v1541_v22  ;;  %1423 = vmatmul.mubr.bf16.gmra.mxu1 %v1542_v23 }
 0x11f   : > { %v1396_v25 = vpop.f32.mrf.mxu0  ;;  %v1412_v26 = vpop.f32.mrf.mxu1 }
 0x120   : > { %v756_v27 = vadd.f32 %v1396_v25, %v1866_v24  ;;  %v772_v28 = vadd.f32 %v1412_v26, %v1866_v24 }
 0x121   : > { %v521_v29 = vpop.f32.mrf.mxu0  ;;  %v585_v30 = vpop.f32.mrf.mxu1 }
 0x122   : > { %vm788_vm0 = vcmp.ge.f32.partialorder %v756_v27, 0.0  ;;  %v820_v31 = vmul.f32 0.01, %v756_v27  ;;  %vm804_vm1 = vcmp.ge.f32.partialorder %v772_v28, 0.0  ;;  %v836_v32 = vmul.f32 0.01, %v772_v28 }
 0x123   : > { %v754_v33 = vadd.f32 %v1866_v24, %v521_v29  ;;  %v770_v34 = vadd.f32 %v1866_v24, %v585_v30  ;;  %v1397_v35 = vpop.f32.mrf.mxu0  ;;  %v1413_v36 = vpop.f32.mrf.mxu1 }
 0x124   : > { %v852_v37 = vsel %vm788_vm0, %v756_v27, %v820_v31  ;;  %v757_v38 = vadd.f32 %v1397_v35, %v1866_v24  ;;  %v773_v39 = vadd.f32 %v1413_v36, %v1866_v24  ;;  %v868_v40 = vsel %vm804_vm1, %v772_v28, %v836_v32 }
 0x125   : > { %vm786_vm2 = vcmp.ge.f32.partialorder %v754_v33, 0.0  ;;  %v818_v41 = vmul.f32 0.01, %v754_v33  ;;  %vm802_vm3 = vcmp.ge.f32.partialorder %v770_v34, 0.0  ;;  %v524_v42 = vpop.f32.mrf.mxu0  ;;  %v588_v43 = vpop.f32.mrf.mxu1  ;;  %v834_v47 = vmul.f32 0.01, %v770_v34 }
 0x126   : > { %vm789_vm4 = vcmp.ge.f32.partialorder %v757_v38, 0.0  ;;  %v821_v44 = vmul.f32 0.01, %v757_v38  ;;  %vm805_vm5 = vcmp.ge.f32.partialorder %v773_v39, 0.0  ;;  %v837_v45 = vmul.f32 0.01, %v773_v39 }
 0x127   : > { %v850_v46 = vsel %vm786_vm2, %v754_v33, %v818_v41  ;;  %v755_v48 = vadd.f32 %v1866_v24, %v524_v42  ;;  %v771_v49 = vadd.f32 %v1866_v24, %v588_v43  ;;  %v1400_v50 = vpop.f32.mrf.mxu0  ;;  %v1416_v51 = vpop.f32.mrf.mxu1  ;;  %v866_v63 = vsel %vm802_vm3, %v770_v34, %v834_v47 }
 0x128   : > { %v853_v52 = vsel %vm789_vm4, %v757_v38, %v821_v44  ;;  %v869_v53 = vsel %vm805_vm5, %v773_v39, %v837_v45  ;;  %v760_v54 = vadd.f32 %v1400_v50, %v1866_v24  ;;  %v776_v55 = vadd.f32 %v1416_v51, %v1866_v24 }
 0x129   : > { %v1267_v56 = vpack.c.bf16 %v853_v52, %v852_v37  ;;  %v1307_v57 = vpack.c.bf16 %v869_v53, %v868_v40  ;;  %vm787_vm6 = vcmp.ge.f32.partialorder %v755_v48, 0.0  ;;  %v819_v58 = vmul.f32 0.01, %v755_v48  ;;  %v537_v59 = vpop.f32.mrf.mxu0  ;;  %v601_v60 = vpop.f32.mrf.mxu1 }
 0x12a   : > { %vm803_vm7 = vcmp.ge.f32.partialorder %v771_v49, 0.0  ;;  %v835_v61 = vmul.f32 0.01, %v771_v49  ;;  %vm792_vm8 = vcmp.ge.f32.partialorder %v760_v54, 0.0  ;;  %v824_v62 = vmul.f32 0.01, %v760_v54 }
 0x12b   : > { %1339 = vst [vmem:[%s1881_s24 + $0x8] sm:$0xff] %v1267_v56   ;;  %1347 = vst [vmem:[%s1881_s24 + $0x48] sm:$0xff] %v1307_v57   ;;  %v851_v0 = vsel %vm787_vm6, %v755_v48, %v819_v58  ;;  %v840_v1 = vmul.f32 0.01, %v776_v55  ;;  %v758_v2 = vadd.f32 %v1866_v24, %v537_v59  ;;  %v1401_v3 = vpop.f32.mrf.mxu0  ;;  %v1417_v4 = vpop.f32.mrf.mxu1  ;;  %vm808_vm9 = vcmp.ge.f32.partialorder %v776_v55, 0.0 }
 0x12c   : > { %v1262_v5 = vpack.c.bf16 %v851_v0, %v850_v46  ;;  %v867_v6 = vsel %vm803_vm7, %v771_v49, %v835_v61  ;;  %v774_v7 = vadd.f32 %v1866_v24, %v601_v60  ;;  %v856_v9 = vsel %vm792_vm8, %v760_v54, %v824_v62 }
 0x12d   : > { %v1302_v8 = vpack.c.bf16 %v867_v6, %v866_v63  ;;  %vm790_vm10 = vcmp.ge.f32.partialorder %v758_v2, 0.0  ;;  %v822_v10 = vmul.f32 0.01, %v758_v2  ;;  %v540_v11 = vpop.f32.mrf.mxu0  ;;  %v604_v12 = vpop.f32.mrf.mxu1  ;;  %v761_v14 = vadd.f32 %v1401_v3, %v1866_v24 }
 0x12e   : > { %1263 = vst [vmem:[%s1881_s24] sm:$0xff] %v1262_v5   ;;  %vm806_vm11 = vcmp.ge.f32.partialorder %v774_v7, 0.0  ;;  %v838_v13 = vmul.f32 0.01, %v774_v7  ;;  %v777_v15 = vadd.f32 %v1417_v4, %v1866_v24  ;;  %v872_v16 = vsel %vm808_vm9, %v776_v55, %v840_v1 }
 0x12f   : > { %1346 = vst [vmem:[%s1881_s24 + $0x40] sm:$0xff] %v1302_v8   ;;  %v854_v17 = vsel %vm790_vm10, %v758_v2, %v822_v10  ;;  %v759_v18 = vadd.f32 %v1866_v24, %v540_v11  ;;  %v775_v19 = vadd.f32 %v1866_v24, %v604_v12  ;;  %v1404_v20 = vpop.f32.mrf.mxu0  ;;  %v1420_v21 = vpop.f32.mrf.mxu1  ;;  %vm793_vm12 = vcmp.ge.f32.partialorder %v761_v14, 0.0 }
 0x130   : > { %v870_v22 = vsel %vm806_vm11, %v774_v7, %v838_v13  ;;  %v825_v23 = vmul.f32 0.01, %v761_v14  ;;  %vm809_vm13 = vcmp.ge.f32.partialorder %v777_v15, 0.0  ;;  %v841_v25 = vmul.f32 0.01, %v777_v15 }
 0x131   : > { %vm791_vm14 = vcmp.ge.f32.partialorder %v759_v18, 0.0  ;;  %v823_v26 = vmul.f32 0.01, %v759_v18  ;;  %vm807_vm15 = vcmp.ge.f32.partialorder %v775_v19, 0.0  ;;  %v553_v27 = vpop.f32.mrf.mxu0  ;;  %v617_v28 = vpop.f32.mrf.mxu1  ;;  %v839_v30 = vmul.f32 0.01, %v775_v19 }
 0x132   : > { %v857_v29 = vsel %vm793_vm12, %v761_v14, %v825_v23  ;;  %v764_v31 = vadd.f32 %v1404_v20, %v1866_v24  ;;  %v780_v32 = vadd.f32 %v1420_v21, %v1866_v24  ;;  %v873_v34 = vsel %vm809_vm13, %v777_v15, %v841_v25 }
 0x133   : > { %v1277_v33 = vpack.c.bf16 %v857_v29, %v856_v9  ;;  %v855_v35 = vsel %vm791_vm14, %v759_v18, %v823_v26  ;;  %v762_v36 = vadd.f32 %v1866_v24, %v553_v27  ;;  %v1405_v37 = vpop.f32.mrf.mxu0  ;;  %v1421_v38 = vpop.f32.mrf.mxu1  ;;  %v1317_v39 = vpack.c.bf16 %v873_v34, %v872_v16 }
 0x134   : > { %v1272_v40 = vpack.c.bf16 %v855_v35, %v854_v17  ;;  %v871_v41 = vsel %vm807_vm15, %v775_v19, %v839_v30  ;;  %vm796_vm0 = vcmp.ge.f32.partialorder %v764_v31, 0.0  ;;  %v828_v43 = vmul.f32 0.01, %v764_v31 }
 0x135   : > { %1341 = vst [vmem:[%s1881_s24 + $0x18] sm:$0xff] %v1277_v33   ;;  %v1312_v42 = vpack.c.bf16 %v871_v41, %v870_v22  ;;  %vm812_vm1 = vcmp.ge.f32.partialorder %v780_v32, 0.0  ;;  %v844_v44 = vmul.f32 0.01, %v780_v32  ;;  %v556_v45 = vpop.f32.mrf.mxu0  ;;  %v620_v46 = vpop.f32.mrf.mxu1  ;;  %1349 = vst [vmem:[%s1881_s24 + $0x58] sm:$0xff] %v1317_v39   ;;  %vm794_vm2 = vcmp.ge.f32.partialorder %v762_v36, 0.0 }
 0x136   : > { %1340 = vst [vmem:[%s1881_s24 + $0x10] sm:$0xff] %v1272_v40   ;;  %v826_v47 = vmul.f32 0.01, %v762_v36  ;;  %v778_v48 = vadd.f32 %v1866_v24, %v617_v28  ;;  %v765_v49 = vadd.f32 %v1405_v37, %v1866_v24  ;;  %v860_v50 = vsel %vm796_vm0, %v764_v31, %v828_v43 }
 0x137   : > { %1348 = vst [vmem:[%s1881_s24 + $0x50] sm:$0xff] %v1312_v42   ;;  %v781_v51 = vadd.f32 %v1421_v38, %v1866_v24  ;;  %v763_v52 = vadd.f32 %v1866_v24, %v556_v45  ;;  %v1408_v53 = vpop.f32.mrf.mxu0  ;;  %v1424_v54 = vpop.f32.mrf.mxu1  ;;  %v876_v55 = vsel %vm812_vm1, %v780_v32, %v844_v44  ;;  %v779_v63 = vadd.f32 %v1866_v24, %v620_v46 }
 0x138   : > { %v858_v56 = vsel %vm794_vm2, %v762_v36, %v826_v47  ;;  %vm810_vm3 = vcmp.ge.f32.partialorder %v778_v48, 0.0  ;;  %vm797_vm4 = vcmp.ge.f32.partialorder %v765_v49, 0.0  ;;  %v829_v57 = vmul.f32 0.01, %v765_v49 }
 0x139   : > { %vm813_vm5 = vcmp.ge.f32.partialorder %v781_v51, 0.0  ;;  %v845_v58 = vmul.f32 0.01, %v781_v51  ;;  %vm795_vm6 = vcmp.ge.f32.partialorder %v763_v52, 0.0  ;;  %v569_v59 = vpop.f32.mrf.mxu0  ;;  %v633_v60 = vpop.f32.mrf.mxu1  ;;  %v842_v61 = vmul.f32 0.01, %v778_v48 }
 0x13a   : > { %v827_v62 = vmul.f32 0.01, %v763_v52  ;;  %v768_v0 = vadd.f32 %v1408_v53, %v1866_v24  ;;  %v861_v1 = vsel %vm797_vm4, %v765_v49, %v829_v57  ;;  %v784_v3 = vadd.f32 %v1424_v54, %v1866_v24 }
 0x13b   : > { %v877_v2 = vsel %vm813_vm5, %v781_v51, %v845_v58  ;;  %v766_v4 = vadd.f32 %v1866_v24, %v569_v59  ;;  %v1409_v5 = vpop.f32.mrf.mxu0  ;;  %v1425_v6 = vpop.f32.mrf.mxu1  ;;  %v1287_v7 = vpack.c.bf16 %v861_v1, %v860_v50  ;;  %vm811_vm7 = vcmp.ge.f32.partialorder %v779_v63, 0.0 }
 0x13c   : > { %v1327_v8 = vpack.c.bf16 %v877_v2, %v876_v55  ;;  %v859_v9 = vsel %vm795_vm6, %v763_v52, %v827_v62  ;;  %v843_v11 = vmul.f32 0.01, %v779_v63  ;;  %v832_v12 = vmul.f32 0.01, %v768_v0 }
 0x13d   : > { %v1282_v10 = vpack.c.bf16 %v859_v9, %v858_v56  ;;  %v874_v13 = vsel %vm810_vm3, %v778_v48, %v842_v61  ;;  %1343 = vst [vmem:[%s1881_s24 + $0x28] sm:$0xff] %v1287_v7   ;;  %vm800_vm8 = vcmp.ge.f32.partialorder %v768_v0, 0.0  ;;  %v848_v15 = vmul.f32 0.01, %v784_v3  ;;  %v572_v18 = vpop.f32.mrf.mxu0  ;;  %v636_v19 = vpop.f32.mrf.mxu1 }
 0x13e   : > { %1351 = vst [vmem:[%s1881_s24 + $0x68] sm:$0xff] %v1327_v8   ;;  %v875_v14 = vsel %vm811_vm7, %v779_v63, %v843_v11  ;;  %v782_v16 = vadd.f32 %v1866_v24, %v633_v60  ;;  %v769_v17 = vadd.f32 %v1409_v5, %v1866_v24  ;;  %vm816_vm9 = vcmp.ge.f32.partialorder %v784_v3, 0.0 }
 0x13f   : > { %1342 = vst [vmem:[%s1881_s24 + $0x20] sm:$0xff] %v1282_v10   ;;  %v1322_v20 = vpack.c.bf16 %v875_v14, %v874_v13  ;;  %vm798_vm10 = vcmp.ge.f32.partialorder %v766_v4, 0.0  ;;  %v785_v21 = vadd.f32 %v1425_v6, %v1866_v24  ;;  %v864_v22 = vsel %vm800_vm8, %v768_v0, %v832_v12 }
 0x140   : > { %v830_v23 = vmul.f32 0.01, %v766_v4  ;;  %vm801_vm11 = vcmp.ge.f32.partialorder %v769_v17, 0.0  ;;  %v833_v25 = vmul.f32 0.01, %v769_v17  ;;  %v767_v27 = vadd.f32 %v1866_v24, %v572_v18 }
 0x141   : > { %1350 = vst [vmem:[%s1881_s24 + $0x60] sm:$0xff] %v1322_v20   ;;  %vm817_vm12 = vcmp.ge.f32.partialorder %v785_v21, 0.0  ;;  %v849_v26 = vmul.f32 0.01, %v785_v21  ;;  %v783_v28 = vadd.f32 %v1866_v24, %v636_v19  ;;  %v880_v29 = vsel %vm816_vm9, %v784_v3, %v848_v15 }
 0x142   : > { %vm814_vm13 = vcmp.ge.f32.partialorder %v782_v16, 0.0  ;;  %v846_v30 = vmul.f32 0.01, %v782_v16  ;;  %v865_v31 = vsel %vm801_vm11, %v769_v17, %v833_v25  ;;  %vm799_vm14 = vcmp.ge.f32.partialorder %v767_v27, 0.0 }
 0x143   : > { %v1297_v32 = vpack.c.bf16 %v865_v31, %v864_v22  ;;  %v881_v33 = vsel %vm817_vm12, %v785_v21, %v849_v26  ;;  %v831_v34 = vmul.f32 0.01, %v767_v27  ;;  %vm815_vm15 = vcmp.ge.f32.partialorder %v783_v28, 0.0 }
 0x144   : > { %v1337_v35 = vpack.c.bf16 %v881_v33, %v880_v29  ;;  %v847_v36 = vmul.f32 0.01, %v783_v28  ;;  %v862_v24 = vsel %vm798_vm10, %v766_v4, %v830_v23  ;;  %v878_v38 = vsel %vm814_vm13, %v782_v16, %v846_v30 }
 0x145   : > { %1345 = vst [vmem:[%s1881_s24 + $0x38] sm:$0xff] %v1297_v32   ;;  %v863_v37 = vsel %vm799_vm14, %v767_v27, %v831_v34 }
 0x146   : > { %1353 = vst [vmem:[%s1881_s24 + $0x78] sm:$0xff] %v1337_v35   ;;  %v1292_v39 = vpack.c.bf16 %v863_v37, %v862_v24  ;;  %v879_v40 = vsel %vm815_vm15, %v783_v28, %v847_v36 }
 0x147   : > { %v1332_v41 = vpack.c.bf16 %v879_v40, %v878_v38 }
 0x148   : > { %1344 = vst [vmem:[%s1881_s24 + $0x30] sm:$0xff] %v1292_v39  }
 0x149   : > { %1352 = vst [vmem:[%s1881_s24 + $0x70] sm:$0xff] %v1332_v41  }
 0x14a   : > { %1610 = shalt.err (!%p1607_p5)
}
 0x14b   : > { %s1611_s18 = scalar_lea.hbm %s1928_s21, 2048  ;;  %s1615_s27 = scalar_lea.hbm %s1983_s3, 4096 }
 0x14c   : > { %p1612_p7 = scmp.ne.s32.totalorder %s1928_s21, %s1611_s18  ;;  %p1616_p9 = scmp.lt.s32.totalorder %s1928_s21, %s1983_s3 }
 0x14d   : > { %p1617_p11 = scmp.lt.s32.totalorder %s1615_s27, %s1611_s18 }
 0x14e   : > { %p1613_p4 = pnand %p1612_p7, %p1800_p13 }
 0x14f   : > { %p1618_p10 = por %p1617_p11, %p1616_p9 }
 0x150   : > { %p1614_p6 = pneg %p1613_p4 }
 0x152   : > { %p1619_p1 = pnand %p1618_p10, %p1614_p6 }
 0x154   : > { %1622 = shalt.err (!%p1619_p1)
}
 0x155   : > { %s1688_s24 = smov 64   ;;  %s1689_s30 = smov 4  }
 0x156   : > { %1448 = dma.vmem_to_hbm [thread:$0]  (%p1800_p13), %s1930_s29, 2048, %s1928_s21, %s1043_s15, %s1688_s24, %s1688_s24, %s1689_s30  }
 0x157 PF: > { %s1071_s5 = sand.u32 1, %s1661_s12   ;;  %p1999_p8 = scmp.ne.s32.totalorder %s1990_s23, 0 }
 0x158   : > { %p2000_p12 = scmp.ge.s32.totalorder %s1681_s17, 2  ;;  %s1072_s6 = scalar_lea.sflag [#allocation5], %s1071_s5 }
 0x15a   : > { %p1459_p0 = pnand %p2000_p12, %p1999_p8 }
 0x15c   : > { %p1460_p2 = pneg %p1459_p0 }
 0x15e   : > { %1656 = dma.done.wait (%p1460_p2), %s1072_s6, 2048  }
 0x15f   : > { %1658 = vsyncadd (%p1460_p2), %s1072_s6, 4294965248  ;;  %s20_s17 = sadd.s32 1, %s1681_s17   ;;  %s2001_s12 = smov %s1665_s13 }
 0x160   : > { %p17_p3 = scmp.ge.s32.totalorder %s20_s17, 4   ;;  %s2002_s13 = smov %s1669_s14 }
 0x161   : > { %s2003_s14 = smov %s1809_s19  ;;  %s2004_s15 = smov %s1677_s16 }
 0x162   : > { %s2005_s16 = smov %s2007_s28  ;;  %19 = sbr.rel (!%p17_p3) target bundleno = 7 (0x7), region = 90 }
 0x167   :  { %1077 = vsyncpa [#allocation4], 1 }
 0x168   :  { %1079 = vsyncpa [#allocation4 + $0x1], 1 }
 0x169   :  { %1080 = vsyncpa [#allocation7], 1 }
 0x16a   :  { %1081 = vsyncpa [#allocation5], 1 }
 0x16b   :  { %1083 = vsyncpa [#allocation5 + $0x1], 1 }

</bundles_post_ra>
